<compile_context>
chip_gen: v5e
topology: v5e:2x2
jax: 0.10.0
libtpu: 0.0.40
codegen_flags: <defaults>
</compile_context>

<pallas_src>
import functools

import numpy as np
import jax
import jax.numpy as jnp
from jax.experimental import pallas as pl
from jax.experimental.pallas import tpu as pltpu

BN_EPS = 1e-5


def _round_up(a, b):
    return ((a + b - 1) // b) * b


def _vmem_capacity_bytes():
    try:
        return int(pltpu.get_tpu_info().vmem_capacity_bytes)
    except Exception:  # pragma: no cover - fallback when info is unavailable
        return 128 << 20


def _default_tile_points(nsample):
    # v5e/v6e (128 MiB VMEM): ~2048-row input tiles; v7x (64 MiB): ~1024-row tiles.
    cap = _vmem_capacity_bytes()
    target_rows = 2048 if cap >= (96 << 20) else 1024
    return max(16, _round_up(target_rows // max(int(nsample), 1), 16))


def _vmem_limit_bytes(tile_rows, tile_points, k_in, c_pad, out_itemsize):
    lane = 128
    x_tile = tile_rows * _round_up(k_in, lane) * 2     # bf16 input tile (lane-padded in VMEM)
    w_b = _round_up(k_in, 16) * c_pad * 2              # resident bf16 weight
    out_b = tile_points * c_pad * out_itemsize         # output tile
    tmp_b = 2 * tile_rows * c_pad * 4                  # in-kernel f32 temporaries (upper bound)
    est = 2 * x_tile + 2 * out_b + w_b + tmp_b + (4 << 20)
    cap = _vmem_capacity_bytes()
    hi = max(32 << 20, (cap * 3) // 4)                 # v7x -> ~48 MiB, v5e/v6e -> ~96 MiB
    return int(min(max(est, 32 << 20), hi))


def _pick_chunks(tile_points, nsample, target_rows=256, max_chunks=8):
    """Split a tile into sub-chunks of complete pooling groups (chunk_rows <= target)."""
    best = (1, tile_points)
    for n_chunks in range(1, max_chunks + 1):
        if tile_points % n_chunks:
            continue
        cp = tile_points // n_chunks
        if (cp * nsample) % 16 != 0:                   # keep bf16 sublane-aligned slices
            continue
        best = (n_chunks, cp)
        if cp * nsample <= target_rows:
            break
    return best


# ----------------------------- Pallas kernels ------------------------------ #
def _stats_kernel(x_ref, w_ref, psum_ref, psumsq_ref):
    """Per-tile partial BN stats of h = x @ w (parallel grid; wrapper reduces partials)."""
    h = jnp.dot(x_ref[...], w_ref[...], preferred_element_type=jnp.float32)
    # Zero-padded rows contribute exactly 0 to both sums; wrapper divides by true count.
    psum_ref[...] = jnp.sum(h, axis=0, keepdims=True)[None]
    psumsq_ref[...] = jnp.sum(h * h, axis=0, keepdims=True)[None]


def _norm_relu_pool_kernel(x_ref, w_ref, scale_ref, shift_ref, o_ref, *,
                           nsample, chunk_points):
    """h = x @ w ; y = relu(h*scale + shift) ; max over nsample groups, chunked."""
    tile_points, c = o_ref.shape
    n_chunks = tile_points // chunk_points
    chunk_rows = chunk_points * nsample
    w = w_ref[...]                 # hoisted: loaded once per tile
    scale = scale_ref[...]
    shift = shift_ref[...]

    def compute(xb, out_rows):
        h = jnp.dot(xb, w, preferred_element_type=jnp.float32)
        y = jnp.maximum(h * scale + shift, 0.0)
        if nsample > 1:
            y = jnp.max(y.reshape(out_rows, nsample, c), axis=1)   # fused MaxPool1d(nsample)
        return y.astype(o_ref.dtype)

    if n_chunks == 1:
        o_ref[...] = compute(x_ref[...], tile_points)
    else:
        def body(ci, carry):
            r0 = pl.multiple_of(ci * chunk_rows, chunk_rows)
            q0 = pl.multiple_of(ci * chunk_points, chunk_points)
            o_ref[pl.ds(q0, chunk_points), :] = compute(
                x_ref[pl.ds(r0, chunk_rows), :], chunk_points)
            return carry
        jax.lax.fori_loop(0, n_chunks, body, 0, unroll=True)


# ------------------------------ fused wrapper ------------------------------- #
def linear_bn_relu_pool(x, w, gamma, beta, *, nsample=1, pool=False,
                        tile_points=None, out_dtype=jnp.bfloat16):
    """Fused Linear(bias=False) + BatchNorm1d(batch stats) + ReLU (+ MaxPool1d(nsample)).

    x : (R, K) merged feature slab (R = n_points * nsample rows, channels-last).
    w : (K, Cout) weight.
    Returns (R // nsample, Cout) if pool else (R, Cout), dtype out_dtype (bf16 by default:
    lane-dense half-width writeback; downstream layers cast to bf16 for matmuls anyway).
    """
    r, k_in = int(x.shape[0]), int(x.shape[1])
    cout = int(w.shape[1])
    ns = int(nsample) if pool else 1
    assert r % ns == 0
    m = r // ns

    if tile_points is None:
        tile_points = _default_tile_points(ns)
    tile_points = max(16, _round_up(int(tile_points), 16))   # sublane-aligned (bf16 output)
    m_pad = _round_up(m, tile_points)
    r_pad = m_pad * ns
    tile_rows = tile_points * ns
    num_tiles = m_pad // tile_points
    grid = (num_tiles,)
    c_pad = _round_up(cout, 128)                              # lane-dense output / weight

    # bf16 matmul operands (halves HBM input traffic); BN math stays in f32.
    xb = x.astype(jnp.bfloat16)
    if r_pad > r:
        xb = jnp.pad(xb, ((0, r_pad - r), (0, 0)))            # zero rows: no effect on stats
    wb = (jnp.zeros((k_in, c_pad), jnp.float32)
          .at[:, :cout].set(w.astype(jnp.float32)).astype(jnp.bfloat16))

    _, chunk_points = _pick_chunks(tile_points, ns)

    x_spec = pl.BlockSpec((tile_rows, k_in), lambda i: (i, 0))
    w_spec = pl.BlockSpec((k_in, c_pad), lambda i: (0, 0))    # resident (same block each step)
    vec_spec = pl.BlockSpec((1, c_pad), lambda i: (0, 0))
    part_spec = pl.BlockSpec((1, 1, c_pad), lambda i: (i, 0, 0))
    out_itemsize = jnp.dtype(out_dtype).itemsize
    vmem_limit = _vmem_limit_bytes(tile_rows, tile_points, k_in, c_pad, out_itemsize)

    # TODO(synk): if DMA is still exposed after stream merging, sweep
    # pipeline_mode=pl.Buffered(3) on x_spec.

    # ---- pass 1: per-tile partial BN statistics (parallel -> megacore on v7x) ----
    psum, psumsq = pl.pallas_call(
        _stats_kernel,
        out_shape=(jax.ShapeDtypeStruct((num_tiles, 1, c_pad), jnp.float32),
                   jax.ShapeDtypeStruct((num_tiles, 1, c_pad), jnp.float32)),
        grid=grid,
        in_specs=[x_spec, w_spec],
        out_specs=(part_spec, part_spec),
        compiler_params=pltpu.CompilerParams(
            dimension_semantics=("parallel",),
            vmem_limit_bytes=vmem_limit),
    )(xb, wb)

    inv_n = 1.0 / float(r)                                    # true (unpadded) row count
    h_sum = jnp.sum(psum[:, 0, :], axis=0, keepdims=True)
    h_sumsq = jnp.sum(psumsq[:, 0, :], axis=0, keepdims=True)
    mean = h_sum * inv_n
    var = jnp.maximum(h_sumsq * inv_n - mean * mean, 0.0)     # biased var (training-mode BN)
    gamma_p = jnp.zeros((1, c_pad), jnp.float32).at[0, :cout].set(gamma.astype(jnp.float32))
    beta_p = jnp.zeros((1, c_pad), jnp.float32).at[0, :cout].set(beta.astype(jnp.float32))
    scale = gamma_p * jax.lax.rsqrt(var + BN_EPS)
    shift = beta_p - mean * scale
    # TODO(synk): BatchNorm1d running_mean/running_var state updates are not produced.

    # ---- pass 2: normalize + ReLU with the neighbourhood max fused in, chunked ----
    out = pl.pallas_call(
        functools.partial(_norm_relu_pool_kernel, nsample=ns, chunk_points=chunk_points),
        out_shape=jax.ShapeDtypeStruct((m_pad, c_pad), out_dtype),
        grid=grid,
        in_specs=[x_spec, w_spec, vec_spec, vec_spec],
        out_specs=pl.BlockSpec((tile_points, c_pad), lambda i: (i, 0)),
        compiler_params=pltpu.CompilerParams(
            dimension_semantics=("parallel",),                # independent tiles -> megacore
            vmem_limit_bytes=vmem_limit),
    )(xb, wb, scale, shift)

    n_keep = m if pool else r
    return out[:n_keep, :cout]


# ------------------ pointops equivalents (on-device, plain JAX) -------------- #
# TODO(synk): sequential FPS + host offset sync dominate wall-clock for large N; a
# blocked/Pallas FPS and precomputed host offsets would be needed for realistic sizes.
def _fps_segment(p_seg, num_samples):
    n = p_seg.shape[0]

    def body(i, carry):
        dist, cur, idx = carry
        idx = idx.at[i].set(cur)
        d = jnp.sum((p_seg - p_seg[cur]) ** 2, axis=1)
        dist = jnp.minimum(dist, d)
        return dist, jnp.argmax(dist).astype(jnp.int32), idx

    init = (jnp.full((n,), 1e10, jnp.float32), jnp.array(0, jnp.int32),
            jnp.zeros((num_samples,), jnp.int32))
    _, _, idx = jax.lax.fori_loop(0, num_samples, body, init)
    return idx


def furthest_point_sampling(p, offsets, new_offsets):
    # pointops.furthestsampling: sequential farthest-point sampling per batch segment.
    parts, sp, ss = [], 0, 0
    for ep, es in zip(offsets, new_offsets):
        parts.append(_fps_segment(p[sp:ep], es - ss) + sp)
        sp, ss = ep, es
    return jnp.concatenate(parts, axis=0)


def knn_query(nsample, p, new_p, offsets, new_offsets):
    # pointops.knnquery: nsample nearest neighbours within each segment (top_k on -dist).
    # Tie-breaking may differ from the CUDA kernel; downstream (shared linear + BN +
    # neighbourhood max) is invariant to neighbour order.
    parts, sp, ss = [], 0, 0
    for ep, es in zip(offsets, new_offsets):
        seg_p, seg_q = p[sp:ep], new_p[ss:es]
        d = jnp.sum((seg_q[:, None, :] - seg_p[None, :, :]) ** 2, axis=-1)
        _, nbr = jax.lax.top_k(-d, nsample)
        parts.append(nbr.astype(jnp.int32) + sp)
        sp, ss = ep, es
    return jnp.concatenate(parts, axis=0)


# ------------------------------ forward pass -------------------------------- #
def transition_down(pxo, params, stride, nsample, *, tile_points=None):
    p, x, o = pxo
    if stride != 1:
        # Segment bookkeeping mirrors the .item() loop of the PyTorch module.
        o_host = [int(v) for v in np.asarray(jax.device_get(o))]
        n_o_list, count, prev = [], 0, 0
        for e in o_host:
            count += (e - prev) // stride
            n_o_list.append(count)
            prev = e
        n_o = jnp.asarray(n_o_list, dtype=jnp.int32)

        samp_idx = furthest_point_sampling(p, o_host, n_o_list)
        n_p = p[samp_idx]                                          # (M, 3)
        knn_idx = knn_query(nsample, p, n_p, o_host, n_o_list)     # (M, nsample)

        # Single merged (M*nsample, 3+Cin) bf16 slab (use_xyz=True): one gather of p,
        # one gather of (already bf16) x, one concat -> one lane-padded stream feeding
        # BOTH Pallas passes with a single weight.
        # TODO(synk): move this gather inside the Pallas pipeline (scalar-prefetched
        # knn_idx + manual DMA gather from an HBM-resident x) to skip this HBM round trip.
        m = int(n_p.shape[0])
        grouped = jnp.concatenate(
            [(p[knn_idx] - n_p[:, None, :]).astype(jnp.bfloat16),
             x.astype(jnp.bfloat16)[knn_idx]], axis=-1).reshape(m * nsample, -1)

        w = params["w"]                                            # (Cout, 3 + Cin)
        x_out = linear_bn_relu_pool(
            grouped, w.T, params["gamma"], params["beta"],
            nsample=nsample, pool=True, tile_points=tile_points)
        return [n_p, x_out, n_o]
    else:
        x_out = linear_bn_relu_pool(
            x, params["w"].T, params["gamma"], params["beta"],
            nsample=1, pool=False, tile_points=tile_points)
        return [p, x_out, o]


# ------------------------- pure-JAX reference (check) ------------------------ #
def _bn_relu_pool_reference(x, w, gamma, beta, nsample, pool):
    xb = x.astype(jnp.bfloat16).astype(jnp.float32)
    wb = w.astype(jnp.float32).astype(jnp.bfloat16).astype(jnp.float32)
    h = xb @ wb
    mean = jnp.mean(h, axis=0, keepdims=True)
    var = jnp.mean(h * h, axis=0, keepdims=True) - mean * mean
    y = (h - mean) * jax.lax.rsqrt(var + BN_EPS)
    y = jnp.maximum(y * gamma.reshape(1, -1) + beta.reshape(1, -1), 0.0)
    if pool:
        y = jnp.max(y.reshape(-1, nsample, y.shape[-1]), axis=1)
    return y


# ---------------------------------- main ------------------------------------ #
if __name__ == "__main__":
    key = jax.random.PRNGKey(0)
    in_planes, out_planes = 16, 32
    stride, nsample = 4, 16
    n_points = 256

    keys = jax.random.split(key, 6)
    p = jax.random.uniform(keys[0], (n_points, 3), dtype=jnp.float32)
    x = jax.random.normal(keys[1], (n_points, in_planes), dtype=jnp.float32)
    o = jnp.asarray([128, 256], dtype=jnp.int32)   # two batch segments of 128 points

    # --- stride != 1: Linear(3+Cin, Cout, bias=False) + BN + ReLU + MaxPool1d(nsample) ---
    params_down = {
        "w": 0.1 * jax.random.normal(keys[2], (out_planes, 3 + in_planes), jnp.float32),
        "gamma": 1.0 + 0.05 * jax.random.normal(keys[3], (out_planes,), jnp.float32),
        "beta": 0.05 * jax.random.normal(keys[4], (out_planes,), jnp.float32),
    }
    # tile_points=48 exercises row padding (m=64 -> m_pad=96) AND the chunked pooling loop.
    n_p, x_down, n_o = transition_down([p, x, o], params_down, stride, nsample, tile_points=48)
    jax.block_until_ready(x_down)
    assert n_p.shape == (n_points // stride, 3)
    assert x_down.shape == (n_points // stride, out_planes)
    assert np.array_equal(np.asarray(n_o), np.array([32, 64], dtype=np.int32))

    # Reference for the grouped path (re-derive the same deterministic FPS/KNN indices).
    o_list, n_o_list = [128, 256], [32, 64]
    samp_idx = furthest_point_sampling(p, o_list, n_o_list)
    knn_idx = knn_query(nsample, p, p[samp_idx], o_list, n_o_list)
    grouped_ref = jnp.concatenate(
        [p[knn_idx] - p[samp_idx][:, None, :], x[knn_idx]], axis=-1
    ).reshape(-1, 3 + in_planes)
    ref_down = _bn_relu_pool_reference(grouped_ref, params_down["w"].T,
                                       params_down["gamma"], params_down["beta"],
                                       nsample, True)
    np.testing.assert_allclose(np.asarray(x_down.astype(jnp.float32)),
                               np.asarray(ref_down), rtol=3e-2, atol=3e-2)

    # --- stride == 1: Linear(Cin, Cout, bias=False) + BN + ReLU ---
    params_same = {
        "w": 0.1 * jax.random.normal(keys[5], (out_planes, in_planes), jnp.float32),
        "gamma": params_down["gamma"],
        "beta": params_down["beta"],
    }
    _, x_same, _ = transition_down([p, x, o], params_same, 1, nsample, tile_points=48)
    jax.block_until_ready(x_same)
    assert x_same.shape == (n_points, out_planes)
    ref_same = _bn_relu_pool_reference(x, params_same["w"].T,
                                       params_same["gamma"], params_same["beta"], 1, False)
    np.testing.assert_allclose(np.asarray(x_same.astype(jnp.float32)),
                               np.asarray(ref_same), rtol=3e-2, atol=3e-2)

    print("KERNEL_OK")
</pallas_src>

<mosaic_0001>
module attributes {stable_mosaic.version = 11 : i64} {
  func.func @_stats_kernel(%arg0: i32, %arg1: memref<768x19xbf16, #tpu.memory_space<vmem>>, %arg2: memref<19x128xbf16, #tpu.memory_space<vmem>>, %arg3: memref<1x1x128xf32, #tpu.memory_space<vmem>>, %arg4: memref<1x1x128xf32, #tpu.memory_space<vmem>>) attributes {dimension_semantics = [#tpu.dimension_semantics<parallel>], iteration_bounds = array<i64: 2>, scalar_prefetch = 0 : i64, scratch_operands = 0 : i64, tpu.core_type = #tpu.core_type<tc>, window_params = [{transform_indices = @transform_0, window_bounds = array<i64: 768, 19>}, {pipeline_mode = #tpu.pipeline_mode<synchronous>, transform_indices = @transform_1, window_bounds = array<i64: 19, 128>}, {transform_indices = @transform_2, window_bounds = array<i64: 1, 1, 128>}, {transform_indices = @transform_3, window_bounds = array<i64: 1, 1, 128>}]} {
    %c0 = arith.constant 0 : index
    %c0_0 = arith.constant 0 : index
    %0 = vector.load %arg1[%c0, %c0_0] : memref<768x19xbf16, #tpu.memory_space<vmem>>, vector<768x19xbf16>
    %c0_1 = arith.constant 0 : index
    %c0_2 = arith.constant 0 : index
    %1 = vector.load %arg2[%c0_1, %c0_2] : memref<19x128xbf16, #tpu.memory_space<vmem>>, vector<19x128xbf16>
    %cst = arith.constant dense<0.000000e+00> : vector<768x128xf32>
    %2 = tpu.matmul %0, %1, %cst {dimension_numbers = #tpu.dot_dimension_numbers<[1], [0], [0], [1], [0, 0, 1, 1], [], []>} : vector<768x19xbf16>, vector<19x128xbf16>, vector<768x128xf32> -> vector<768x128xf32>
    %cst_3 = arith.constant dense<0.000000e+00> : vector<128xf32>
    %3 = vector.multi_reduction <add>, %2, %cst_3 [0] : vector<768x128xf32> to vector<128xf32>
    %4 = vector.shape_cast %3 : vector<128xf32> to vector<1x128xf32>
    %5 = vector.shape_cast %4 : vector<1x128xf32> to vector<1x1x128xf32>
    %c0_4 = arith.constant 0 : index
    %c0_5 = arith.constant 0 : index
    %c0_6 = arith.constant 0 : index
    %6 = vector.load %arg3[%c0_4, %c0_5, %c0_6] : memref<1x1x128xf32, #tpu.memory_space<vmem>>, vector<1x1x128xf32>
    tpu.vector_store %arg3[%c0_4, %c0_5, %c0_6], %5 {strides = array<i32>} : memref<1x1x128xf32, #tpu.memory_space<vmem>>, vector<1x1x128xf32>,
    %7 = arith.mulf %2, %2 : vector<768x128xf32>
    %cst_7 = arith.constant dense<0.000000e+00> : vector<128xf32>
    %8 = vector.multi_reduction <add>, %7, %cst_7 [0] : vector<768x128xf32> to vector<128xf32>
    %9 = vector.shape_cast %8 : vector<128xf32> to vector<1x128xf32>
    %10 = vector.shape_cast %9 : vector<1x128xf32> to vector<1x1x128xf32>
    %c0_8 = arith.constant 0 : index
    %c0_9 = arith.constant 0 : index
    %c0_10 = arith.constant 0 : index
    %11 = vector.load %arg4[%c0_8, %c0_9, %c0_10] : memref<1x1x128xf32, #tpu.memory_space<vmem>>, vector<1x1x128xf32>
    tpu.vector_store %arg4[%c0_8, %c0_9, %c0_10], %10 {strides = array<i32>} : memref<1x1x128xf32, #tpu.memory_space<vmem>>, vector<1x1x128xf32>,
    return
  }
  func.func @transform_0(%arg0: i32) -> (i32, i32) {
    %c0_i32 = arith.constant 0 : i32
    %c0_i32_0 = arith.constant 0 : i32
    return %arg0, %c0_i32 : i32, i32
  }
  func.func @transform_1(%arg0: i32) -> (i32, i32) {
    %c0_i32 = arith.constant 0 : i32
    %c0_i32_0 = arith.constant 0 : i32
    %c0_i32_1 = arith.constant 0 : i32
    return %c0_i32, %c0_i32_0 : i32, i32
  }
  func.func @transform_2(%arg0: i32) -> (i32, i32, i32) {
    %c0_i32 = arith.constant 0 : i32
    %c0_i32_0 = arith.constant 0 : i32
    %c0_i32_1 = arith.constant 0 : i32
    return %arg0, %c0_i32, %c0_i32_0 : i32, i32, i32
  }
  func.func @transform_3(%arg0: i32) -> (i32, i32, i32) {
    %c0_i32 = arith.constant 0 : i32
    %c0_i32_0 = arith.constant 0 : i32
    %c0_i32_1 = arith.constant 0 : i32
    return %arg0, %c0_i32, %c0_i32_0 : i32, i32, i32
  }
}

</mosaic_0001>

<bundles_post_ra>
// kernel: tpu_custom_call.1
= control target key start
LH: loop header
LB: loop body
LE: loop exit
PB: predicated region body
PF: predicated region fallthrough
CT: control target
= control target key end

     0   :  { %9 = vsyncpa [#allocation3], 0  ;;  %s2322_s0 = inlined_call_operand.vmem [shape: bf16[1536,19], index: 0, kind: input, shape index: {}]   ;;  %s2323_s1 = inlined_call_operand.vmem [shape: bf16[19,128], index: 1, kind: input, shape index: {}]   ;;  %s2324_s2 = inlined_call_operand.hbm [shape: f32[2,1,128], index: 2, kind: output, shape index: {0}]   ;;  %s2325_s3 = inlined_call_operand.hbm [shape: f32[2,1,128], index: 3, kind: output, shape index: {1}]  }
   0x1   :  { %11 = vsyncpa [#allocation3 + $0x1], 0 }
   0x2   :  { %12 = vsyncpa [#allocation5], 0 }
   0x3   :  { %14 = vsyncpa [#allocation5 + $0x1], 0  ;;  %s1811_s12 = smov 0   ;;  %s1813_s13 = smov 0  }
   0x4   :  { %s1815_s14 = smov 0   ;;  %s1817_s15 = smov 0  }
   0x5 LB: > { %s1832_s16 = sadd.s32 4294967295, %s1788_s15   ;;  %s1343_s17 = sadd.s32 4294967294, %s1788_s15   ;;  %s1788_s15 = sphi %s1817_s15, %s2340_s15   ;;  %s1784_s14 = sphi %s1815_s14, %s2339_s14   ;;  %s1780_s13 = sphi %s1813_s13, %s2338_s13   ;;  %s1776_s12 = sphi %s1811_s12, %s2337_s12  }
   0x6   : > { %s1836_s18 = sadd.s32 1, %s1788_s15   ;;  %s74_s19 = sadd.s32 1, %s1784_s14 }
   0x7   : > { %s71_s20 = ssub.s32 %s1788_s15, %s1836_s18  ;;  %p84_p0 = scmp.ne.s32.totalorder %s1784_s14, %s1780_s13 }
   0x8   : > { %p72_p1 = scmp.eq.s32.totalorder %s71_s20, 0  ;;  %p85_p2 = scmp.eq.s32.totalorder %s1832_s16, 1 }
   0x9   : > { %p90_p3 = scmp.ne.s32.totalorder %s1780_s13, %s1776_s12  ;;  %p91_p4 = scmp.eq.s32.totalorder %s1343_s17, 1 }
   0xa   : > { %s1847_s21 = scalar_select %p72_p1, %s1784_s14, %s74_s19  }
   0xb   : > { %p1849_p5 = por %p85_p2, %p84_p0  ;;  %p1853_p6 = por %p91_p4, %p90_p3 }
   0xc   : > { %p1346_p7 = scmp.ge.s32.totalorder %s1788_s15, 1  ;;  %p147_p8 = scmp.lt.s32.totalorder %s1788_s15, 3 }
   0xe   : > { %p148_p9 = pnand %p1346_p7, %p147_p8 }
  0x10   : > { %151 = sbr.rel (%p148_p9) target bundleno = 518 (0x206), region = 28 }
  0x15   : > { %v279_v0 = vld [vmem:[%s2323_s1 + $0x8] sm:$0x3]  ;;  %vm674_vm0 = vcmask 1040384   ;;  %vm675_vm1 = vcmask 1041408   ;;  %v1790_v2 = vmov 65535   ;;  %s174_s26 = smul.u32 96, %s1832_s16  ;;  %s1243_s9 = scalar_lea.hbm %s2324_s2, %s1832_s16 }
  0x16   : > { %v525_v1 = vunpack.c.l.b16 %v279_v0  ;;  %v676_v3 = vsel %vm674_vm0, 4294967295, %v1790_v2  ;;  %v1642_v7 = vld [vmem:[%s2323_s1] sm:$0xff]  ;;  %vm529_vm2 = vcmask 154624   ;;  %s2253_s6 = sand.u32 1, %s1780_s13   ;;  %s1256_s17 = scalar_lea.hbm %s2325_s3, %s1832_s16 }
  0x17   : > { %v677_v4 = vsel %vm675_vm1, %v676_v3, 0  ;;  %p175_p10 = scmp.lt.s32.totalorder %s174_s26, 191  ;;  %s167_s19 = scalar_lea.vmem [#allocation2], %s2253_s6 }
  0x18   : > { %v527_v5 = vpack.c.b16 %v525_v1, %v525_v1  ;;  %s2264_s20 = sshll.u32 %s167_s19, 4  ;;  %s2266_s24 = sshll.u32 %s1243_s9, 4  ;;  %s1246_s20 = int_to_ptr.vmem [resolvable:$true] %s2264_s20  ;;  %s1248_s24 = int_to_ptr.hbm [resolvable:$true] %s2266_s24 }
  0x19   : > { %s2342_s26 = smov (!%p175_p10, %s174_s26), 191  ;;  %s173_s25 = scalar_lea.vmem [#allocation4], %s2253_s6 }
  0x1a   : > { %v679_v6 = vand.u32 %v677_v4, %v527_v5  ;;  %s1347_s29 = sshll.u32 %s2342_s26, 2  ;;  %s2269_s26 = sshll.u32 %s173_s25, 4  ;;  %s1259_s26 = int_to_ptr.vmem [resolvable:$true] %s2269_s26 }
  0x1b   : > { %s1869_s5 = scalar_lea.vmem %s2322_s0, %s1347_s29  ;;  %s2271_s27 = sshll.u32 %s1256_s17, 4  ;;  %s1261_s27 = int_to_ptr.hbm [resolvable:$true] %s2271_s27 }
  0x1c   : > { %687 = vmatpush.bf16.msra.mxu0 %v679_v6  ;;  %1643 = vmatpush.bf16.msra.mxu1 %v679_v6  ;;  %v1594_v8 = vld [vmem:[%s1869_s5] sm:$0xff]  ;;  %v1595_v10 = vld [vmem:[%s1869_s5 + $0x8] sm:$0xff]  ;;  %v1596_v12 = vld [vmem:[%s1869_s5 + $0x10] sm:$0xff]  ;;  %s1231_s16 = scalar_lea.sflag [#allocation3], %s2253_s6  ;;  %s1708_s28 = sshra.s32 %s1248_s24, 4  ;;  %s1709_s28 = int_to_ptr.hbm [resolvable:$true] %s1708_s28 }
  0x1d   : > { %1644 = vmatpush.bf16.msra.mxu2 %v679_v6  ;;  %1645 = vmatpush.bf16.msra.mxu3 %v679_v6  ;;  %v1606_v9 = vld [vmem:[%s1869_s5 + $0x60] sm:$0xff]  ;;  %v1607_v11 = vld [vmem:[%s1869_s5 + $0x68] sm:$0xff]  ;;  %v1608_v13 = vld [vmem:[%s1869_s5 + $0x70] sm:$0xff]  ;;  %s1710_s29 = scalar_lea.hbm %s1709_s28, 1  ;;  %p1715_p0 = scmp.lt.s32.totalorder %s1709_s28, %s2324_s2 }
  0x1e   : > { %v1597_v14 = vld [vmem:[%s1869_s5 + $0x18] sm:$0xff]  ;;  %v1618_v15 = vld [vmem:[%s1869_s5 + $0xc0] sm:$0xff]  ;;  %v1619_v18 = vld [vmem:[%s1869_s5 + $0xc8] sm:$0xff]  ;;  %p1711_p11 = scmp.ne.s32.totalorder %s1709_s28, %s1710_s29 }
  0x1f   : > { %v1609_v16 = vld [vmem:[%s1869_s5 + $0x78] sm:$0xff]  ;;  %v1598_v17 = vld [vmem:[%s1869_s5 + $0x20] sm:$0xff]  ;;  %v1599_v20 = vld [vmem:[%s1869_s5 + $0x28] sm:$0xff] }
  0x20   : > { %688 = vmatpush.bf16.msra.mxu0 %v1642_v7  ;;  %1646 = vmatpush.bf16.msra.mxu1 %v1642_v7  ;;  %v1610_v19 = vld [vmem:[%s1869_s5 + $0x80] sm:$0xff]  ;;  %v1620_v21 = vld [vmem:[%s1869_s5 + $0xd0] sm:$0xff]  ;;  %v1611_v22 = vld [vmem:[%s1869_s5 + $0x88] sm:$0xff]  ;;  %p1712_p12 = pnand %p1711_p11, %p1849_p5 }
  0x21   : > { %1647 = vmatpush.bf16.msra.mxu2 %v1642_v7  ;;  %1648 = vmatpush.bf16.msra.mxu3 %v1642_v7  ;;  %v1600_v23 = vld [vmem:[%s1869_s5 + $0x30] sm:$0xff]  ;;  %v1621_v24 = vld [vmem:[%s1869_s5 + $0xd8] sm:$0xff]  ;;  %v1630_v25 = vld [vmem:[%s1869_s5 + $0x120] sm:$0xff] }
  0x22   : > { %v1612_v26 = vld [vmem:[%s1869_s5 + $0x90] sm:$0xff]  ;;  %v1601_v27 = vld [vmem:[%s1869_s5 + $0x38] sm:$0xff]  ;;  %v1622_v28 = vld [vmem:[%s1869_s5 + $0xe0] sm:$0xff]  ;;  %p1713_p13 = pneg %p1712_p12 }
  0x23   : > { %1544 = vmatmul.msk.bf16.vlgmr.msra.gmra.mxu0 %vm529_vm2, %v1594_v8  ;;  %1556 = vmatmul.msk.bf16.vlgmr.msra.gmra.mxu1 %vm529_vm2, %v1606_v9  ;;  %v1631_v29 = vld [vmem:[%s1869_s5 + $0x128] sm:$0xff]  ;;  %v1613_v30 = vld [vmem:[%s1869_s5 + $0x98] sm:$0xff]  ;;  %v1602_v31 = vld [vmem:[%s1869_s5 + $0x40] sm:$0xff] }
  0x24   : > { %1568 = vmatmul.msk.bf16.vlgmr.msra.gmra.mxu2 %vm529_vm2, %v1618_v15  ;;  %1580 = vmatmul.msk.bf16.vlgmr.msra.gmra.mxu3 %vm529_vm2, %v1630_v25  ;;  %v1623_v33 = vld [vmem:[%s1869_s5 + $0xe8] sm:$0xff]  ;;  %v1632_v34 = vld [vmem:[%s1869_s5 + $0x130] sm:$0xff]  ;;  %v1614_v40 = vld [vmem:[%s1869_s5 + $0xa0] sm:$0xff] }
  0x25   : > { %v1603_v42 = vld [vmem:[%s1869_s5 + $0x48] sm:$0xff]  ;;  %v1624_v48 = vld [vmem:[%s1869_s5 + $0xf0] sm:$0xff]  ;;  %v1633_v49 = vld [vmem:[%s1869_s5 + $0x138] sm:$0xff] }
  0x26   : > { %v1615_v54 = vld [vmem:[%s1869_s5 + $0xa8] sm:$0xff]  ;;  %v1604_v56 = vld [vmem:[%s1869_s5 + $0x50] sm:$0xff]  ;;  %v1625_v62 = vld [vmem:[%s1869_s5 + $0xf8] sm:$0xff] }
  0x27   : > { %v1634_v63 = vld [vmem:[%s1869_s5 + $0x140] sm:$0xff]  ;;  %v1616_v4 = vld [vmem:[%s1869_s5 + $0xb0] sm:$0xff]  ;;  %v1605_v6 = vld [vmem:[%s1869_s5 + $0x58] sm:$0xff] }
  0x33   : > { %1545 = vmatmul.msk.bf16.gmra.mxu0 %vm529_vm2, %v1595_v10  ;;  %1557 = vmatmul.msk.bf16.gmra.mxu1 %vm529_vm2, %v1607_v11 }
  0x34   : > { %1569 = vmatmul.msk.bf16.gmra.mxu2 %vm529_vm2, %v1619_v18  ;;  %1581 = vmatmul.msk.bf16.gmra.mxu3 %vm529_vm2, %v1631_v29  ;;  %v1617_v18 = vld [vmem:[%s1869_s5 + $0xb8] sm:$0xff] }
  0x43   : > { %1546 = vmatmul.msk.bf16.gmra.mxu0 %vm529_vm2, %v1596_v12  ;;  %1558 = vmatmul.msk.bf16.gmra.mxu1 %vm529_vm2, %v1608_v13  ;;  %v1626_v12 = vld [vmem:[%s1869_s5 + $0x100] sm:$0xff]  ;;  %v1635_v13 = vld [vmem:[%s1869_s5 + $0x148] sm:$0xff] }
  0x44   : > { %1570 = vmatmul.msk.bf16.gmra.mxu2 %vm529_vm2, %v1620_v21  ;;  %1582 = vmatmul.msk.bf16.gmra.mxu3 %vm529_vm2, %v1632_v34 }
  0x53   : > { %1547 = vmatmul.msk.bf16.gmra.mxu0 %vm529_vm2, %v1597_v14  ;;  %1559 = vmatmul.msk.bf16.gmra.mxu1 %vm529_vm2, %v1609_v16 }
  0x54   : > { %1571 = vmatmul.msk.bf16.gmra.mxu2 %vm529_vm2, %v1621_v24  ;;  %1583 = vmatmul.msk.bf16.gmra.mxu3 %vm529_vm2, %v1633_v49 }
  0x63   : > { %1548 = vmatmul.msk.bf16.gmra.mxu0 %vm529_vm2, %v1598_v17  ;;  %1560 = vmatmul.msk.bf16.gmra.mxu1 %vm529_vm2, %v1610_v19 }
  0x64   : > { %1572 = vmatmul.msk.bf16.gmra.mxu2 %vm529_vm2, %v1622_v28  ;;  %1584 = vmatmul.msk.bf16.gmra.mxu3 %vm529_vm2, %v1634_v63 }
  0x73   : > { %1549 = vmatmul.msk.bf16.gmra.mxu0 %vm529_vm2, %v1599_v20  ;;  %1561 = vmatmul.msk.bf16.gmra.mxu1 %vm529_vm2, %v1611_v22 }
  0x74   : > { %1573 = vmatmul.msk.bf16.gmra.mxu2 %vm529_vm2, %v1623_v33  ;;  %1585 = vmatmul.msk.bf16.gmra.mxu3 %vm529_vm2, %v1635_v13  ;;  %v1640_v13 = vld [vmem:[%s1869_s5 + $0x170] sm:$0xff] }
  0x83   : > { %1550 = vmatmul.msk.bf16.gmra.mxu0 %vm529_vm2, %v1600_v23  ;;  %1562 = vmatmul.msk.bf16.gmra.mxu1 %vm529_vm2, %v1612_v26  ;;  %v1627_v26 = vld [vmem:[%s1869_s5 + $0x108] sm:$0xff] }
  0x84   : > { %1574 = vmatmul.msk.bf16.gmra.mxu2 %vm529_vm2, %v1624_v48 }
  0x93   : > { %1551 = vmatmul.msk.bf16.gmra.mxu0 %vm529_vm2, %v1601_v27  ;;  %1563 = vmatmul.msk.bf16.gmra.mxu1 %vm529_vm2, %v1613_v30  ;;  %v1636_v27 = vld [vmem:[%s1869_s5 + $0x150] sm:$0xff] }
  0x94   : > { %1575 = vmatmul.msk.bf16.gmra.mxu2 %vm529_vm2, %v1625_v62  ;;  %1586 = vmatmul.msk.bf16.gmra.mxu3 %vm529_vm2, %v1636_v27 }
  0xa0   : > { %v690_v32 = vpop.f32.mrf.mxu0  ;;  %v1923_v36 = vpop.f32.mrf.mxu1 }
  0xa1   : > { %v1032_v37 = vmul.f32 %v690_v32, %v690_v32 }
  0xa3   : > { %1552 = vmatmul.msk.bf16.gmra.mxu0 %vm529_vm2, %v1602_v31  ;;  %1564 = vmatmul.msk.bf16.gmra.mxu1 %vm529_vm2, %v1614_v40 }
  0xa4   : > { %1576 = vmatmul.msk.bf16.gmra.mxu2 %vm529_vm2, %v1626_v12 }
  0xa7   : > { %v1959_v17 = vpop.f32.mrf.mxu2 }
  0xa8   : > { %v692_v35 = vpop.f32.mrf.mxu0  ;;  %v1928_v44 = vpop.f32.mrf.mxu1 }
  0xa9   : > { %v930_v38 = vadd.f32 %v692_v35, %v690_v32  ;;  %v1033_v39 = vmul.f32 %v692_v35, %v692_v35 }
  0xab   : > { %v1128_v41 = vadd.f32 %v1033_v39, %v1032_v37 }
  0xaf   : > { %v1965_v24 = vpop.f32.mrf.mxu2 }
  0xb0   : > { %v695_v43 = vpop.f32.mrf.mxu0  ;;  %v1935_v51 = vpop.f32.mrf.mxu1 }
  0xb1   : > { %v931_v45 = vadd.f32 %v930_v38, %v695_v43  ;;  %v1034_v46 = vmul.f32 %v695_v43, %v695_v43 }
  0xb3   : > { %v1129_v47 = vadd.f32 %v1128_v41, %v1034_v46  ;;  %1553 = vmatmul.msk.bf16.gmra.mxu0 %vm529_vm2, %v1603_v42  ;;  %1565 = vmatmul.msk.bf16.gmra.mxu1 %vm529_vm2, %v1615_v54  ;;  %v1628_v41 = vld [vmem:[%s1869_s5 + $0x110] sm:$0xff]  ;;  %v1637_v42 = vld [vmem:[%s1869_s5 + $0x158] sm:$0xff] }
  0xb4   : > { %1577 = vmatmul.msk.bf16.gmra.mxu2 %vm529_vm2, %v1627_v26  ;;  %1587 = vmatmul.msk.bf16.gmra.mxu3 %vm529_vm2, %v1637_v42 }
  0xb7   : > { %v1973_v32 = vpop.f32.mrf.mxu2 }
  0xb8   : > { %v697_v50 = vpop.f32.mrf.mxu0  ;;  %v1940_v58 = vpop.f32.mrf.mxu1 }
  0xb9   : > { %v932_v52 = vadd.f32 %v931_v45, %v697_v50  ;;  %v1035_v53 = vmul.f32 %v697_v50, %v697_v50 }
  0xbb   : > { %v1130_v55 = vadd.f32 %v1129_v47, %v1035_v53 }
  0xbf   : > { %v1977_v39 = vpop.f32.mrf.mxu2 }
  0xc0   : > { %v700_v57 = vpop.f32.mrf.mxu0  ;;  %v1947_v1 = vpop.f32.mrf.mxu1 }
  0xc1   : > { %v933_v59 = vadd.f32 %v932_v52, %v700_v57  ;;  %v1036_v60 = vmul.f32 %v700_v57, %v700_v57  ;;  %v1638_v57 = vld [vmem:[%s1869_s5 + $0x160] sm:$0xff] }
  0xc3   : > { %v1131_v61 = vadd.f32 %v1130_v55, %v1036_v60  ;;  %1554 = vmatmul.msk.bf16.gmra.mxu0 %vm529_vm2, %v1604_v56  ;;  %1566 = vmatmul.msk.bf16.gmra.mxu1 %vm529_vm2, %v1616_v4  ;;  %v1629_v56 = vld [vmem:[%s1869_s5 + $0x118] sm:$0xff] }
  0xc4   : > { %1578 = vmatmul.msk.bf16.gmra.mxu2 %vm529_vm2, %v1628_v41  ;;  %1588 = vmatmul.msk.bf16.gmra.mxu3 %vm529_vm2, %v1638_v57 }
  0xc7   : > { %v1983_v47 = vpop.f32.mrf.mxu2 }
  0xc8   : > { %v702_v0 = vpop.f32.mrf.mxu0  ;;  %v1952_v10 = vpop.f32.mrf.mxu1 }
  0xc9   : > { %v934_v2 = vadd.f32 %v933_v59, %v702_v0  ;;  %v1037_v3 = vmul.f32 %v702_v0, %v702_v0 }
  0xcb   : > { %v1132_v5 = vadd.f32 %v1131_v61, %v1037_v3  ;;  %v1995_v61 = vpop.f32.mrf.mxu3  ;;  %v1639_v3 = vld [vmem:[%s1869_s5 + $0x168] sm:$0xff] }
  0xcf   : > { %v1987_v54 = vpop.f32.mrf.mxu2 }
  0xd0   : > { %v705_v7 = vpop.f32.mrf.mxu0  ;;  %v1963_v20 = vpop.f32.mrf.mxu1 }
  0xd1   : > { %v935_v8 = vadd.f32 %v934_v2, %v705_v7  ;;  %v1038_v9 = vmul.f32 %v705_v7, %v705_v7 }
  0xd3   : > { %v1133_v11 = vadd.f32 %v1132_v5, %v1038_v9  ;;  %1555 = vmatmul.msk.bf16.gmra.mxu0 %vm529_vm2, %v1605_v6  ;;  %1567 = vmatmul.msk.bf16.gmra.mxu1 %vm529_vm2, %v1617_v18  ;;  %v2001_v2 = vpop.f32.mrf.mxu3 }
  0xd4   : > { %1579 = vmatmul.msk.bf16.gmra.mxu2 %vm529_vm2, %v1629_v56  ;;  %1589 = vmatmul.msk.bf16.gmra.mxu3 %vm529_vm2, %v1639_v3 }
  0xd7   : > { %v1997_v62 = vpop.f32.mrf.mxu2 }
  0xd8   : > { %v707_v14 = vpop.f32.mrf.mxu0  ;;  %v1971_v28 = vpop.f32.mrf.mxu1 }
  0xd9   : > { %v936_v15 = vadd.f32 %v935_v8, %v707_v14  ;;  %v1039_v16 = vmul.f32 %v707_v14, %v707_v14 }
  0xdb   : > { %v1134_v19 = vadd.f32 %v1133_v11, %v1039_v16  ;;  %v2009_v7 = vpop.f32.mrf.mxu3 }
  0xdf   : > { %v2005_v4 = vpop.f32.mrf.mxu2 }
  0xe0   : > { %v710_v21 = vpop.f32.mrf.mxu0  ;;  %v1975_v35 = vpop.f32.mrf.mxu1 }
  0xe1   : > { %v937_v22 = vadd.f32 %v936_v15, %v710_v21  ;;  %v1040_v23 = vmul.f32 %v710_v21, %v710_v21 }
  0xe3   : > { %v1135_v25 = vadd.f32 %v1134_v19, %v1040_v23  ;;  %v2013_v11 = vpop.f32.mrf.mxu3 }
  0xe4   : > { %1590 = vmatmul.msk.bf16.gmra.mxu3 %vm529_vm2, %v1640_v13 }
  0xe7   : > { %v2011_v9 = vpop.f32.mrf.mxu2 }
  0xe8   : > { %v712_v29 = vpop.f32.mrf.mxu0  ;;  %v1985_v48 = vpop.f32.mrf.mxu1 }
  0xe9   : > { %v938_v30 = vadd.f32 %v937_v22, %v712_v29  ;;  %v1041_v31 = vmul.f32 %v712_v29, %v712_v29  ;;  %v1641_v22 = vld [vmem:[%s1869_s5 + $0x178] sm:$0xff]  ;;  %s1714_s5 = scalar_lea.hbm %s2324_s2, 2 }
  0xea   : > { %p1716_p1 = scmp.lt.s32.totalorder %s1714_s5, %s1710_s29 }
  0xeb   : > { %v1136_v33 = vadd.f32 %v1135_v25, %v1041_v31  ;;  %v2019_v15 = vpop.f32.mrf.mxu3 }
  0xec   : > { %p1717_p2 = por %p1716_p1, %p1715_p0 }
  0xee   : > { %p1718_p3 = pnand %p1717_p2, %p1713_p13 }
  0xef   : > { %v2021_v16 = vpop.f32.mrf.mxu2 }
  0xf0   : > { %v715_v34 = vpop.f32.mrf.mxu0  ;;  %v1991_v59 = vpop.f32.mrf.mxu1 }
  0xf1   : > { %v939_v37 = vadd.f32 %v938_v30, %v715_v34  ;;  %v1042_v38 = vmul.f32 %v715_v34, %v715_v34 }
  0xf3   : > { %v1137_v40 = vadd.f32 %v1136_v33, %v1042_v38  ;;  %v2025_v21 = vpop.f32.mrf.mxu3 }
  0xf4   : > { %2331 = vst [vmem:[#allocation8_spill] sm:$0xff] %v2025_v21  ;;  %1591 = vmatmul.msk.bf16.gmra.mxu3 %vm529_vm2, %v1641_v22 }
  0xf7   : > { %v2028_v23 = vpop.f32.mrf.mxu2 }
  0xf8   : > { %v717_v43 = vpop.f32.mrf.mxu0  ;;  %v1999_v63 = vpop.f32.mrf.mxu1 }
  0xf9   : > { %v940_v45 = vadd.f32 %v939_v37, %v717_v43  ;;  %v1043_v46 = vmul.f32 %v717_v43, %v717_v43 }
  0xfb   : > { %v1138_v49 = vadd.f32 %v1137_v40, %v1043_v46  ;;  %v2033_v27 = vpop.f32.mrf.mxu3 }
  0xfc   : > { %2332 = vst [vmem:[#allocation9_spill] sm:$0xff] %v2033_v27 }
  0xff   : > { %v2035_v29 = vpop.f32.mrf.mxu2 }
 0x100   : > { %v720_v50 = vpop.f32.mrf.mxu0  ;;  %v2007_v6 = vpop.f32.mrf.mxu1 }
 0x101   : > { %v941_v52 = vadd.f32 %v940_v45, %v720_v50  ;;  %v1044_v53 = vmul.f32 %v720_v50, %v720_v50 }
 0x103   : > { %v1139_v55 = vadd.f32 %v1138_v49, %v1044_v53  ;;  %v2039_v38 = vpop.f32.mrf.mxu3 }
 0x104   : > { %2333 = vst [vmem:[#allocation10_spill] sm:$0xff] %v2039_v38 }
 0x107   : > { %v2041_v45 = vpop.f32.mrf.mxu2 }
 0x108   : > { %v722_v60 = vpop.f32.mrf.mxu0  ;;  %v2015_v12 = vpop.f32.mrf.mxu1 }
 0x109   : > { %v1045_v33 = vmul.f32 %v722_v60, %v722_v60  ;;  %v942_v34 = vadd.f32 %v941_v52, %v722_v60 }
 0x10b   : > { %v1140_v40 = vadd.f32 %v1139_v55, %v1045_v33 }
 0x110   : > { %v725_v0 = vpop.f32.mrf.mxu0  ;;  %v2023_v18 = vpop.f32.mrf.mxu1 }
 0x111   : > { %v1046_v37 = vmul.f32 %v725_v0, %v725_v0  ;;  %v943_v41 = vadd.f32 %v942_v34, %v725_v0  ;;  %v2045_v0 = vpop.f32.mrf.mxu3 }
 0x113   : > { %v1141_v46 = vadd.f32 %v1140_v40, %v1046_v37  ;;  %v2047_v37 = vpop.f32.mrf.mxu2 }
 0x118   : > { %v727_v5 = vpop.f32.mrf.mxu0  ;;  %v2031_v25 = vpop.f32.mrf.mxu1 }
 0x119   : > { %v1047_v42 = vmul.f32 %v727_v5, %v727_v5  ;;  %v944_v49 = vadd.f32 %v943_v41, %v727_v5 }
 0x11b   : > { %v1142_v56 = vadd.f32 %v1141_v46, %v1047_v42 }
 0x120   : > { %v730_v8 = vpop.f32.mrf.mxu0  ;;  %v2037_v31 = vpop.f32.mrf.mxu1 }
 0x121   : > { %v1048_v50 = vmul.f32 %v730_v8, %v730_v8  ;;  %v945_v57 = vadd.f32 %v944_v49, %v730_v8 }
 0x123   : > { %v1143_v13 = vadd.f32 %v1142_v56, %v1048_v50 }
 0x128   : > { %v732_v14 = vpop.f32.mrf.mxu0  ;;  %v2043_v53 = vpop.f32.mrf.mxu1 }
 0x129   : > { %v1049_v3 = vmul.f32 %v732_v14, %v732_v14  ;;  %v946_v22 = vadd.f32 %v945_v57, %v732_v14 }
 0x12b   : > { %v1144_v60 = vadd.f32 %v1143_v13, %v1049_v3  ;;  %v2051_v13 = vpop.f32.mrf.mxu3 }
 0x130   : > { %v735_v19 = vpop.f32.mrf.mxu0  ;;  %v2049_v42 = vpop.f32.mrf.mxu1 }
 0x131   : > { %v1050_v52 = vmul.f32 %v735_v19, %v735_v19  ;;  %v947_v27 = vadd.f32 %v946_v22, %v735_v19 }
 0x133   : > { %v1145_v33 = vadd.f32 %v1144_v60, %v1050_v52  ;;  %v1058_v60 = vmul.f32 %v1935_v51, %v1935_v51 }
 0x138   : > { %v737_v26 = vpop.f32.mrf.mxu0  ;;  %v797_v52 = vpop.f32.mrf.mxu1 }
 0x139   : > { %v1051_v38 = vmul.f32 %v737_v26, %v737_v26  ;;  %v948_v34 = vadd.f32 %v947_v27, %v737_v26  ;;  %v1056_v26 = vmul.f32 %v1923_v36, %v1923_v36 }
 0x13b   : > { %v1146_v5 = vadd.f32 %v1145_v33, %v1051_v38  ;;  %v2056_v38 = vpop.f32.mrf.mxu2 }
 0x140   : > { %v740_v30 = vpop.f32.mrf.mxu0 }
 0x141   : > { %v1052_v21 = vmul.f32 %v740_v30, %v740_v30  ;;  %v949_v40 = vadd.f32 %v948_v34, %v740_v30  ;;  %v1059_v34 = vmul.f32 %v1940_v58, %v1940_v58 }
 0x143   : > { %v1147_v8 = vadd.f32 %v1146_v5, %v1052_v21  ;;  %v1057_v21 = vmul.f32 %v1928_v44, %v1928_v44 }
 0x148   : > { %v742_v43 = vpop.f32.mrf.mxu0 }
 0x149   : > { %v1053_v41 = vmul.f32 %v742_v43, %v742_v43  ;;  %v950_v46 = vadd.f32 %v949_v40, %v742_v43  ;;  %v1060_v40 = vmul.f32 %v1947_v1, %v1947_v1 }
 0x14b   : > { %v1148_v49 = vadd.f32 %v1147_v8, %v1053_v41  ;;  %v2070_v8 = vpop.f32.mrf.mxu3 }
 0x150   : > { %v745_v55 = vpop.f32.mrf.mxu0 }
 0x151   : > { %v1054_v14 = vmul.f32 %v745_v55, %v745_v55  ;;  %v951_v50 = vadd.f32 %v950_v46, %v745_v55  ;;  %v1061_v46 = vmul.f32 %v1952_v10, %v1952_v10 }
 0x153   : > { %v1149_v56 = vadd.f32 %v1148_v49, %v1054_v14  ;;  %v2075_v49 = vpop.f32.mrf.mxu2 }
 0x158   : > { %v747_v19 = vpop.f32.mrf.mxu0 }
 0x159   : > { %v952_v57 = vadd.f32 %v951_v50, %v747_v19  ;;  %v1055_v3 = vmul.f32 %v747_v19, %v747_v19 }
 0x15b   : > { %v953_v27 = vadd.f32 %v952_v57, %v1923_v36  ;;  %v1150_v30 = vadd.f32 %v1149_v56, %v1055_v3  ;;  %v800_v56 = vpop.f32.mrf.mxu1 }
 0x15d   : > { %v954_v43 = vadd.f32 %v953_v27, %v1928_v44  ;;  %v1151_v22 = vadd.f32 %v1150_v30, %v1056_v26  ;;  %v1064_v26 = vmul.f32 %v1975_v35, %v1975_v35  ;;  %v1065_v30 = vmul.f32 %v1985_v48, %v1985_v48 }
 0x15f   : > { %v955_v55 = vadd.f32 %v954_v43, %v1935_v51  ;;  %v1152_v33 = vadd.f32 %v1151_v22, %v1057_v21  ;;  %v2089_v43 = vpop.f32.mrf.mxu3  ;;  %v1066_v22 = vmul.f32 %v1991_v59, %v1991_v59 }
 0x161   : > { %v956_v36 = vadd.f32 %v955_v55, %v1940_v58  ;;  %v1153_v5 = vadd.f32 %v1152_v33, %v1058_v60  ;;  %v1062_v58 = vmul.f32 %v1963_v20, %v1963_v20  ;;  %v2094_v55 = vpop.f32.mrf.mxu2 }
 0x163   : > { %v957_v41 = vadd.f32 %v956_v36, %v1947_v1  ;;  %v1154_v44 = vadd.f32 %v1153_v5, %v1059_v34  ;;  %v1063_v1 = vmul.f32 %v1971_v28, %v1971_v28  ;;  %v802_v36 = vpop.f32.mrf.mxu1 }
 0x165   : > { %v958_v51 = vadd.f32 %v957_v41, %v1952_v10  ;;  %v1155_v14 = vadd.f32 %v1154_v44, %v1060_v40  ;;  %v1069_v41 = vmul.f32 %v2015_v12, %v2015_v12 }
 0x167   : > { %v959_v50 = vadd.f32 %v958_v51, %v1963_v20  ;;  %v1156_v19 = vadd.f32 %v1155_v14, %v1061_v46  ;;  %v1070_v46 = vmul.f32 %v2023_v18, %v2023_v18  ;;  %v2108_v14 = vpop.f32.mrf.mxu3 }
 0x169   : > { %v960_v57 = vadd.f32 %v959_v50, %v1971_v28  ;;  %v1157_v3 = vadd.f32 %v1156_v19, %v1062_v58  ;;  %v1071_v58 = vmul.f32 %v2031_v25, %v2031_v25  ;;  %v2113_v19 = vpop.f32.mrf.mxu2 }
 0x16b   : > { %v961_v10 = vadd.f32 %v960_v57, %v1975_v35  ;;  %v1158_v27 = vadd.f32 %v1157_v3, %v1063_v1  ;;  %v1067_v35 = vmul.f32 %v1999_v63, %v1999_v63  ;;  %v805_v3 = vpop.f32.mrf.mxu1 }
 0x16d   : > { %v1159_v21 = vadd.f32 %v1158_v27, %v1064_v26  ;;  %v962_v20 = vadd.f32 %v961_v10, %v1985_v48  ;;  %v1068_v48 = vmul.f32 %v2007_v6, %v2007_v6 }
 0x16f   : > { %v963_v28 = vadd.f32 %v962_v20, %v1991_v59  ;;  %v1160_v60 = vadd.f32 %v1159_v21, %v1065_v30 }
 0x171   : > { %v964_v33 = vadd.f32 %v963_v28, %v1999_v63  ;;  %v1161_v34 = vadd.f32 %v1160_v60, %v1066_v22  ;;  %v1075_v22 = vmul.f32 %v797_v52, %v797_v52  ;;  %v2124_v28 = vpop.f32.mrf.mxu3 }
 0x173   : > { %v965_v5 = vadd.f32 %v964_v33, %v2007_v6  ;;  %v1162_v40 = vadd.f32 %v1161_v34, %v1067_v35  ;;  %v1076_v35 = vmul.f32 %v800_v56, %v800_v56  ;;  %v2126_v33 = vpop.f32.mrf.mxu2 }
 0x175   : > { %v966_v59 = vadd.f32 %v965_v5, %v2015_v12  ;;  %v1163_v44 = vadd.f32 %v1162_v40, %v1068_v48  ;;  %v1072_v12 = vmul.f32 %v2037_v31, %v2037_v31  ;;  %v807_v5 = vpop.f32.mrf.mxu1 }
 0x177   : > { %v967_v51 = vadd.f32 %v966_v59, %v2023_v18  ;;  %v1164_v63 = vadd.f32 %v1163_v44, %v1069_v41  ;;  %v1073_v18 = vmul.f32 %v2043_v53, %v2043_v53  ;;  %v1078_v59 = vmul.f32 %v805_v3, %v805_v3 }
 0x179   : > { %v968_v6 = vadd.f32 %v967_v51, %v2031_v25  ;;  %v1165_v50 = vadd.f32 %v1164_v63, %v1070_v46  ;;  %v1074_v25 = vmul.f32 %v2049_v42, %v2049_v42  ;;  %v1079_v46 = vmul.f32 %v807_v5, %v807_v5 }
 0x17b   : > { %v969_v1 = vadd.f32 %v968_v6, %v2037_v31  ;;  %v1166_v57 = vadd.f32 %v1165_v50, %v1071_v58  ;;  %v2131_v58 = vpop.f32.mrf.mxu3  ;;  %v857_v50 = vpop.f32.mrf.mxu2 }
 0x17d   : > { %v970_v26 = vadd.f32 %v969_v1, %v2043_v53  ;;  %v1167_v10 = vadd.f32 %v1166_v57, %v1072_v12  ;;  %v1077_v53 = vmul.f32 %v802_v36, %v802_v36  ;;  %v1082_v12 = vmul.f32 %v1973_v32, %v1973_v32 }
 0x17f   : > { %v971_v27 = vadd.f32 %v970_v26, %v2049_v42  ;;  %v1168_v30 = vadd.f32 %v1167_v10, %v1073_v18  ;;  %v1084_v26 = vmul.f32 %v1983_v47, %v1983_v47 }
 0x181   : > { %v1169_v21 = vadd.f32 %v1168_v30, %v1074_v25  ;;  %v972_v20 = vadd.f32 %v971_v27, %v797_v52  ;;  %v1080_v52 = vmul.f32 %v1959_v17, %v1959_v17  ;;  %v1085_v27 = vmul.f32 %v1987_v54, %v1987_v54 }
 0x183   : > { %v1170_v31 = vadd.f32 %v1169_v21, %v1075_v22  ;;  %v973_v60 = vadd.f32 %v972_v20, %v800_v56  ;;  %v1081_v56 = vmul.f32 %v1965_v24, %v1965_v24  ;;  %v1086_v21 = vmul.f32 %v1997_v62, %v1997_v62  ;;  %v860_v22 = vpop.f32.mrf.mxu2 }
 0x185   : > { %v1171_v34 = vadd.f32 %v1170_v31, %v1076_v35  ;;  %v974_v48 = vadd.f32 %v973_v60, %v802_v36  ;;  %v1087_v31 = vmul.f32 %v2005_v4, %v2005_v4  ;;  %v1088_v35 = vmul.f32 %v2011_v9, %v2011_v9 }
 0x187   : > { %v1172_v40 = vadd.f32 %v1171_v34, %v1077_v53  ;;  %v975_v41 = vadd.f32 %v974_v48, %v805_v3  ;;  %v1083_v3 = vmul.f32 %v1977_v39, %v1977_v39  ;;  %v1089_v48 = vmul.f32 %v2021_v16, %v2021_v16 }
 0x189   : > { %v1173_v44 = vadd.f32 %v1172_v40, %v1078_v59  ;;  %v976_v42 = vadd.f32 %v975_v41, %v807_v5  ;;  %v1090_v5 = vmul.f32 %v2028_v23, %v2028_v23  ;;  %v1091_v59 = vmul.f32 %v2035_v29, %v2035_v29 }
 0x18b   : > { %v977_v51 = vadd.f32 %v976_v42, %v1959_v17  ;;  %v1174_v63 = vadd.f32 %v1173_v44, %v1079_v46  ;;  %v862_v42 = vpop.f32.mrf.mxu2  ;;  %v1092_v46 = vmul.f32 %v2041_v45, %v2041_v45 }
 0x18d   : > { %v978_v36 = vadd.f32 %v977_v51, %v1965_v24  ;;  %v1175_v6 = vadd.f32 %v1174_v63, %v1080_v52  ;;  %v1093_v51 = vmul.f32 %v2047_v37, %v2047_v37 }
 0x18f   : > { %v979_v1 = vadd.f32 %v978_v36, %v1973_v32  ;;  %v1176_v57 = vadd.f32 %v1175_v6, %v1081_v56  ;;  %v2148_v32 = vpop.f32.mrf.mxu3  ;;  %v1094_v56 = vmul.f32 %v2056_v38, %v2056_v38  ;;  %v1095_v6 = vmul.f32 %v2075_v49, %v2075_v49 }
 0x191   : > { %v980_v17 = vadd.f32 %v979_v1, %v1977_v39  ;;  %v1177_v18 = vadd.f32 %v1176_v57, %v1082_v12  ;;  %v1096_v57 = vmul.f32 %v2094_v55, %v2094_v55 }
 0x193   : > { %v981_v10 = vadd.f32 %v980_v17, %v1983_v47  ;;  %v1178_v24 = vadd.f32 %v1177_v18, %v1083_v3  ;;  %v865_v17 = vpop.f32.mrf.mxu2 }
 0x195   : > { %v982_v25 = vadd.f32 %v981_v10, %v1987_v54  ;;  %v1179_v30 = vadd.f32 %v1178_v24, %v1084_v26 }
 0x197   : > { %v983_v39 = vadd.f32 %v982_v25, %v1997_v62  ;;  %v1180_v20 = vadd.f32 %v1179_v30, %v1085_v27  ;;  %v1099_v30 = vmul.f32 %v857_v50, %v857_v50 }
 0x199   : > { %v984_v47 = vadd.f32 %v983_v39, %v2005_v4  ;;  %v1181_v60 = vadd.f32 %v1180_v20, %v1086_v21  ;;  %v2165_v4 = vpop.f32.mrf.mxu3 }
 0x19b   : > { %v985_v54 = vadd.f32 %v984_v47, %v2011_v9  ;;  %v1182_v34 = vadd.f32 %v1181_v60, %v1087_v31  ;;  %v1101_v60 = vmul.f32 %v862_v42, %v862_v42 }
 0x19d   : > { %v1183_v53 = vadd.f32 %v1182_v34, %v1088_v35  ;;  %v986_v62 = vadd.f32 %v985_v54, %v2021_v16  ;;  %v867_v35 = vpop.f32.mrf.mxu2  ;;  %v1102_v34 = vmul.f32 %v865_v17, %v865_v17 }
 0x19f   : > { %v987_v40 = vadd.f32 %v986_v62, %v2028_v23  ;;  %v1184_v41 = vadd.f32 %v1183_v53, %v1089_v48  ;;  %v1103_v62 = vmul.f32 %v867_v35, %v867_v35 }
 0x1a1   : > { %v988_v9 = vadd.f32 %v987_v40, %v2035_v29  ;;  %v1185_v44 = vadd.f32 %v1184_v41, %v1090_v5 }
 0x1a3   : > { %v989_v16 = vadd.f32 %v988_v9, %v2041_v45  ;;  %v1186_v52 = vadd.f32 %v1185_v44, %v1091_v59  ;;  %v2182_v45 = vpop.f32.mrf.mxu3  ;;  %v1106_v9 = vmul.f32 %v2009_v7, %v2009_v7 }
 0x1a5   : > { %v990_v23 = vadd.f32 %v989_v16, %v2047_v37  ;;  %v1187_v63 = vadd.f32 %v1186_v52, %v1092_v46  ;;  %v1107_v46 = vmul.f32 %v2013_v11, %v2013_v11  ;;  %v1108_v52 = vmul.f32 %v2019_v15, %v2019_v15 }
 0x1a7   : > { %v991_v36 = vadd.f32 %v990_v23, %v2056_v38  ;;  %v1188_v29 = vadd.f32 %v1187_v63, %v1093_v51  ;;  %v1097_v38 = vmul.f32 %v2113_v19, %v2113_v19  ;;  %v2334_v23 = vld [vmem:[#allocation8_spill] sm:$0xff] }
 0x1a8   : > { %v1109_v63 = vmul.f32 %v2334_v23, %v2334_v23 }
 0x1a9   : > { %v992_v12 = vadd.f32 %v991_v36, %v2075_v49  ;;  %v1189_v1 = vadd.f32 %v1188_v29, %v1094_v56  ;;  %v1098_v49 = vmul.f32 %v2126_v33, %v2126_v33 }
 0x1ab   : > { %v993_v37 = vadd.f32 %v992_v12, %v2094_v55  ;;  %v1190_v3 = vadd.f32 %v1189_v1, %v1095_v6  ;;  %v1100_v55 = vmul.f32 %v860_v22, %v860_v22  ;;  %v2193_v20 = vpop.f32.mrf.mxu3  ;;  %v2336_v1 = vld [vmem:[#allocation10_spill] sm:$0xff] }
 0x1ad   : > { %v994_v18 = vadd.f32 %v993_v37, %v2113_v19  ;;  %v1191_v26 = vadd.f32 %v1190_v3, %v1096_v57  ;;  %v1111_v57 = vmul.f32 %v2336_v1, %v2336_v1  ;;  %v1112_v3 = vmul.f32 %v2045_v0, %v2045_v0 }
 0x1af   : > { %v1192_v10 = vadd.f32 %v1191_v26, %v1097_v38  ;;  %v995_v24 = vadd.f32 %v994_v18, %v2126_v33  ;;  %v1104_v33 = vmul.f32 %v1995_v61, %v1995_v61  ;;  %v1113_v38 = vmul.f32 %v2051_v13, %v2051_v13 }
 0x1b1   : > { %v1193_v27 = vadd.f32 %v1192_v10, %v1098_v49  ;;  %v996_v25 = vadd.f32 %v995_v24, %v857_v50  ;;  %v1114_v24 = vmul.f32 %v2070_v8, %v2070_v8 }
 0x1b3   : > { %v1194_v21 = vadd.f32 %v1193_v27, %v1099_v30  ;;  %v997_v39 = vadd.f32 %v996_v25, %v860_v22  ;;  %v1105_v22 = vmul.f32 %v2001_v2, %v2001_v2  ;;  %v917_v59 = vpop.f32.mrf.mxu3  ;;  %v1115_v25 = vmul.f32 %v2089_v43, %v2089_v43 }
 0x1b5   : > { %v1195_v31 = vadd.f32 %v1194_v21, %v1100_v55  ;;  %v998_v47 = vadd.f32 %v997_v39, %v862_v42  ;;  %v1116_v39 = vmul.f32 %v2108_v14, %v2108_v14 }
 0x1b7   : > { %v1196_v19 = vadd.f32 %v1195_v31, %v1101_v60  ;;  %v999_v54 = vadd.f32 %v998_v47, %v865_v17  ;;  %v1118_v60 = vmul.f32 %v2131_v58, %v2131_v58 }
 0x1b9   : > { %v1197_v48 = vadd.f32 %v1196_v19, %v1102_v34  ;;  %v1000_v53 = vadd.f32 %v999_v54, %v867_v35  ;;  %v1119_v19 = vmul.f32 %v2148_v32, %v2148_v32 }
 0x1bb   : > { %v1001_v50 = vadd.f32 %v1000_v53, %v1995_v61  ;;  %v1198_v5 = vadd.f32 %v1197_v48, %v1103_v62 }
 0x1bd   : > { %v1002_v40 = vadd.f32 %v1001_v50, %v2001_v2  ;;  %v1199_v41 = vadd.f32 %v1198_v5, %v1104_v33  ;;  %v1121_v33 = vmul.f32 %v2182_v45, %v2182_v45 }
 0x1bf   : > { %v1003_v44 = vadd.f32 %v1002_v40, %v2009_v7  ;;  %v1200_v42 = vadd.f32 %v1199_v41, %v1105_v22  ;;  %v2335_v7 = vld [vmem:[#allocation9_spill] sm:$0xff]  ;;  %v1123_v41 = vmul.f32 %v917_v59, %v917_v59 }
 0x1c0   : > { %v1110_v29 = vmul.f32 %v2335_v7, %v2335_v7 }
 0x1c1   : > { %v1004_v16 = vadd.f32 %v1003_v44, %v2013_v11  ;;  %v1201_v61 = vadd.f32 %v1200_v42, %v1106_v9  ;;  %v920_v11 = vpop.f32.mrf.mxu3 }
 0x1c2   : > { %v1124_v44 = vmul.f32 %v920_v11, %v920_v11 }
 0x1c3   : > { %v1005_v51 = vadd.f32 %v1004_v16, %v2019_v15  ;;  %v1202_v2 = vadd.f32 %v1201_v61, %v1107_v46 }
 0x1c5   : > { %v1006_v56 = vadd.f32 %v1005_v51, %v2334_v23  ;;  %v1203_v36 = vadd.f32 %v1202_v2, %v1108_v52 }
 0x1c7   : > { %v1007_v6 = vadd.f32 %v1006_v56, %v2335_v7  ;;  %v1204_v12 = vadd.f32 %v1203_v36, %v1109_v63 }
 0x1c9   : > { %v1008_v37 = vadd.f32 %v1007_v6, %v2336_v1  ;;  %v1205_v15 = vadd.f32 %v1204_v12, %v1110_v29 }
 0x1cb   : > { %v1009_v17 = vadd.f32 %v1008_v37, %v2045_v0  ;;  %v1206_v18 = vadd.f32 %v1205_v15, %v1111_v57  ;;  %v922_v0 = vpop.f32.mrf.mxu3 }
 0x1cc   : > { %v1125_v16 = vmul.f32 %v922_v0, %v922_v0 }
 0x1cd   : > { %v1207_v26 = vadd.f32 %v1206_v18, %v1112_v3  ;;  %v1010_v10 = vadd.f32 %v1009_v17, %v2051_v13  ;;  %v1117_v13 = vmul.f32 %v2124_v28, %v2124_v28 }
 0x1cf   : > { %v1011_v49 = vadd.f32 %v1010_v10, %v2070_v8  ;;  %v1208_v27 = vadd.f32 %v1207_v26, %v1113_v38 }
 0x1d1   : > { %v1012_v30 = vadd.f32 %v1011_v49, %v2089_v43  ;;  %v1209_v21 = vadd.f32 %v1208_v27, %v1114_v24 }
 0x1d3   : > { %v1013_v55 = vadd.f32 %v1012_v30, %v2108_v14  ;;  %v1210_v31 = vadd.f32 %v1209_v21, %v1115_v25  ;;  %v1120_v14 = vmul.f32 %v2165_v4, %v2165_v4 }
 0x1d5   : > { %v1014_v47 = vadd.f32 %v1013_v55, %v2124_v28  ;;  %v1211_v8 = vadd.f32 %v1210_v31, %v1116_v39  ;;  %v925_v28 = vpop.f32.mrf.mxu3 }
 0x1d6   : > { %v1126_v51 = vmul.f32 %v925_v28, %v925_v28 }
 0x1d7   : > { %v1015_v35 = vadd.f32 %v1014_v47, %v2131_v58  ;;  %v1212_v43 = vadd.f32 %v1211_v8, %v1117_v13 }
 0x1d9   : > { %v1016_v54 = vadd.f32 %v1015_v35, %v2148_v32  ;;  %v1213_v34 = vadd.f32 %v1212_v43, %v1118_v60  ;;  %v1122_v32 = vmul.f32 %v2193_v20, %v2193_v20 }
 0x1db   : > { %v1017_v48 = vadd.f32 %v1016_v54, %v2165_v4  ;;  %v1214_v53 = vadd.f32 %v1213_v34, %v1119_v19 }
 0x1dd   : > { %v1018_v62 = vadd.f32 %v1017_v48, %v2182_v45  ;;  %v1215_v58 = vadd.f32 %v1214_v53, %v1120_v14  ;;  %v927_v61 = vpop.f32.mrf.mxu3 }
 0x1de   : > { %v1127_v63 = vmul.f32 %v927_v61, %v927_v61 }
 0x1df   : > { %v1216_v50 = vadd.f32 %v1215_v58, %v1121_v33  ;;  %v1019_v5 = vadd.f32 %v1018_v62, %v2193_v20 }
 0x1e1   : > { %v1217_v22 = vadd.f32 %v1216_v50, %v1122_v32  ;;  %v1020_v40 = vadd.f32 %v1019_v5, %v917_v59 }
 0x1e3   : > { %v1218_v9 = vadd.f32 %v1217_v22, %v1123_v41  ;;  %v1021_v4 = vadd.f32 %v1020_v40, %v920_v11 }
 0x1e5   : > { %v1219_v42 = vadd.f32 %v1218_v9, %v1124_v44  ;;  %v1022_v46 = vadd.f32 %v1021_v4, %v922_v0 }
 0x1e7   : > { %v1220_v45 = vadd.f32 %v1219_v42, %v1125_v16  ;;  %v1023_v52 = vadd.f32 %v1022_v46, %v925_v28 }
 0x1e9   : > { %v1221_v2 = vadd.f32 %v1220_v45, %v1126_v51  ;;  %v1024_v23 = vadd.f32 %v1023_v52, %v927_v61 }
 0x1eb   : > { %v1025_v20 = vrot.slane %v1024_v23, 4  ;;  %v1222_v56 = vadd.f32 %v1221_v2, %v1127_v63 }
 0x1ed   : > { %v1026_v59 = vadd.f32 %v1025_v20, %v1024_v23  ;;  %v1223_v36 = vrot.slane %v1222_v56, 4 }
 0x1ef   : > { %v1027_v7 = vrot.slane %v1026_v59, 2  ;;  %v1224_v29 = vadd.f32 %v1223_v36, %v1222_v56 }
 0x1f1   : > { %v1028_v6 = vadd.f32 %v1027_v7, %v1026_v59  ;;  %v1225_v12 = vrot.slane %v1224_v29, 2 }
 0x1f3   : > { %v1029_v11 = vrot.slane %v1028_v6, 1  ;;  %v1226_v1 = vadd.f32 %v1225_v12, %v1224_v29 }
 0x1f5   : > { %v1030_v57 = vadd.f32 %v1029_v11, %v1028_v6  ;;  %v1227_v37 = vrot.slane %v1226_v1, 1 }
 0x1f7   : > { %1031 = vst [vmem:[%s167_s19] sm:$0x1] %v1030_v57  ;;  %v1228_v15 = vadd.f32 %v1227_v37, %v1226_v1 }
 0x1f8   : > { %1721 = shalt.err (!%p1718_p3)
}
 0x1f9   : > { %1649 = dma.vmem_to_hbm [thread:$0]  (%p1849_p5), %s1246_s20, 16, %s1248_s24, %s1231_s16   ;;  %1229 = vst [vmem:[%s173_s25] sm:$0x1] %v1228_v15 }
 0x1fa   : > { %s1235_s9 = scalar_lea.sflag [#allocation5], %s2253_s6  ;;  %s1736_s10 = sshra.s32 %s1261_s27, 4  ;;  %s1737_s10 = int_to_ptr.hbm [resolvable:$true] %s1736_s10 }
 0x1fb   : > { %s1738_s11 = scalar_lea.hbm %s1737_s10, 1  ;;  %s1742_s28 = scalar_lea.hbm %s2325_s3, 2 }
 0x1fc   : > { %p1739_p4 = scmp.ne.s32.totalorder %s1737_s10, %s1738_s11  ;;  %p1743_p9 = scmp.lt.s32.totalorder %s1737_s10, %s2325_s3 }
 0x1fd   : > { %p1744_p10 = scmp.lt.s32.totalorder %s1742_s28, %s1738_s11 }
 0x1fe   : > { %p1740_p7 = pnand %p1739_p4, %p1849_p5 }
 0x1ff   : > { %p1745_p11 = por %p1744_p10, %p1743_p9 }
 0x200   : > { %p1741_p8 = pneg %p1740_p7 }
 0x202   : > { %p1746_p12 = pnand %p1745_p11, %p1741_p8 }
 0x204   : > { %1749 = shalt.err (!%p1746_p12)
}
 0x205   : > { %1650 = dma.vmem_to_hbm [thread:$0]  (%p1849_p5), %s1259_s26, 16, %s1261_s27, %s1235_s9  }
 0x206 PF: > { %p1660_p13 = scmp.ge.s32.totalorder %s1788_s15, 2  ;;  %s1272_s6 = sand.u32 1, %s1776_s12  }
 0x207   : > { %s1273_s20 = scalar_lea.sflag [#allocation3], %s1272_s6 }
 0x208   : > { %p1654_p0 = pnand %p1660_p13, %p1853_p6 }
 0x20a   : > { %p1655_p1 = pneg %p1654_p0 }
 0x20c   : > { %1767 = dma.done.wait (%p1655_p1), %s1273_s20, 16  }
 0x20d   : > { %1769 = vsyncadd (%p1655_p1), %s1273_s20, 4294967280  ;;  %s1282_s24 = scalar_lea.sflag [#allocation5], %s1272_s6 }
 0x20e   : > { %1771 = dma.done.wait (%p1655_p1), %s1282_s24, 16  }
 0x20f   : > { %1773 = vsyncadd (%p1655_p1), %s1282_s24, 4294967280  ;;  %p17_p5 = scmp.ge.s32.totalorder %s1836_s18, 4   ;;  %s2337_s12 = smov %s1780_s13 }
 0x210   : > { %s2338_s13 = smov %s1784_s14  ;;  %s2339_s14 = smov %s1847_s21 }
 0x211   : > { %s2340_s15 = smov %s1836_s18  ;;  %19 = sbr.rel (!%p17_p5) target bundleno = 5 (0x5), region = 80 }
 0x216   :  { %1287 = vsyncpa [#allocation3], 1 }
 0x217   :  { %1289 = vsyncpa [#allocation3 + $0x1], 1 }
 0x218   :  { %1290 = vsyncpa [#allocation5], 1 }
 0x219   :  { %1292 = vsyncpa [#allocation5 + $0x1], 1 }

</bundles_post_ra>
